<compile_context>
chip_gen: v6e
topology: v6e:2x2x1
jax: 0.10.0
libtpu: 0.0.40
codegen_flags: <defaults>
</compile_context>

<pallas_src>
import functools

import jax
import jax.numpy as jnp
from jax import lax
from jax.experimental import pallas as pl
from jax.experimental.pallas import tpu as pltpu

ALPHA = 0.85
GAMMA = 2.0
LANE = 128
MAX_BLOCK_ROWS = 8192                  # ~4 MiB of f32 working set per block
VMEM_LIMIT_BYTES = 48 * 1024 * 1024    # > v5e's 16 MiB scoped default, < v7x physical VMEM


def _pow_gamma(one_minus_pt, gamma):
    """Trace-time specialization of (1 - pt) ** gamma (gamma=2 -> one multiply)."""
    g = float(gamma)
    if g == 2.0:
        return one_minus_pt * one_minus_pt
    if g.is_integer() and g >= 0:
        return lax.integer_pow(one_minus_pt, int(g))
    return one_minus_pt ** jnp.float32(g)


def _focal_elementwise(x, t, alpha, gamma):
    """Elementwise focal loss in f32, shared by kernel / tail path / reference."""
    x = x.astype(jnp.float32)
    t = t.astype(jnp.float32)
    # Numerically stable BCE-with-logits (== F.binary_cross_entropy_with_logits):
    #   bce = max(x, 0) - x * t + log1p(exp(-|x|))
    bce = jnp.maximum(x, 0.0) - x * t + jnp.log1p(jnp.exp(-jnp.abs(x)))
    pt = jnp.exp(-bce)
    return jnp.float32(alpha) * _pow_gamma(1.0 - pt, gamma) * bce


def _sublane_multiple(dtype):
    return max(8, 32 // jnp.dtype(dtype).itemsize)


def _round_up(x, m):
    return ((x + m - 1) // m) * m


def _focal_loss_kernel(x_ref, t_ref, o_ref, *, row_tile, rows, num_blocks,
                       alpha, gamma, last_partial):
    f_loss = _focal_elementwise(x_ref[...], t_ref[...], alpha, gamma)

    def fold(v):
        # (row_tile, LANE) -> (1, 8, LANE): the reshape only splits the
        # sublane-major axis (layout-free), so this is pure per-vreg VALU adds.
        return v.reshape(row_tile // 8, 8, LANE).sum(axis=0).reshape(1, 8, LANE)

    if not last_partial:
        # No partial block exists -> no mask code is emitted at all.
        o_ref[...] = fold(f_loss)
        return

    # Only the last block can be row-partial; rows past `valid_rows` are
    # uninitialized VMEM (possibly NaN/Inf) and must be dropped via select
    # (never multiply) before they reach the partial sum.
    valid_rows = rows - (num_blocks - 1) * row_tile   # static Python int

    def store_masked():
        row_ids = lax.broadcasted_iota(jnp.int32, (row_tile, LANE), 0)
        o_ref[...] = fold(jnp.where(row_ids < valid_rows, f_loss, 0.0))

    if num_blocks == 1:
        store_masked()
    else:
        i = pl.program_id(0)

        @pl.when(i < num_blocks - 1)
        def _():
            o_ref[...] = fold(f_loss)          # hot path: unmasked

        @pl.when(i == num_blocks - 1)
        def _():
            store_masked()                     # mask only on the last step


def focal_loss(inputs, targets, alpha=ALPHA, gamma=GAMMA):
    """Mean binary focal loss with logits (module defaults: logits=True, reduce=True)."""
    assert inputs.shape == targets.shape
    n_total = int(inputs.size)
    assert n_total > 0

    flat_x = inputs.reshape(-1)
    flat_t = targets.reshape(-1)

    rows = n_total // LANE
    n_main = rows * LANE
    total = jnp.float32(0.0)

    # Ragged (<128-element) tail: tiny plain-jnp sum, no pad / full-array copy.
    if n_main < n_total:
        total = total + jnp.sum(
            _focal_elementwise(flat_x[n_main:], flat_t[n_main:], alpha, gamma))

    if rows > 0:
        x2 = (flat_x if n_main == n_total else flat_x[:n_main]).reshape(rows, LANE)
        t2 = (flat_t if n_main == n_total else flat_t[:n_main]).reshape(rows, LANE)

        # Dtype-aware tile: sublane-packing-aligned, bounded by MAX_BLOCK_ROWS
        # and by the (sub-aligned) row count for small inputs.
        sub = max(_sublane_multiple(x2.dtype), _sublane_multiple(t2.dtype))
        cap = max(sub, (MAX_BLOCK_ROWS // sub) * sub)
        row_tile = min(cap, _round_up(rows, sub))
        num_blocks = pl.cdiv(rows, row_tile)
        last_partial = (rows % row_tile) != 0

        kernel = functools.partial(
            _focal_loss_kernel,
            row_tile=row_tile, rows=rows, num_blocks=num_blocks,
            alpha=float(alpha), gamma=float(gamma), last_partial=last_partial)

        partials = pl.pallas_call(
            kernel,
            out_shape=jax.ShapeDtypeStruct((num_blocks, 8, LANE), jnp.float32),
            grid_spec=pltpu.PrefetchScalarGridSpec(
                num_scalar_prefetch=0,
                grid=(num_blocks,),
                in_specs=[
                    pl.BlockSpec((row_tile, LANE), lambda i: (i, 0)),
                    pl.BlockSpec((row_tile, LANE), lambda i: (i, 0)),
                ],
                out_specs=pl.BlockSpec((1, 8, LANE), lambda i: (i, 0, 0)),
            ),
            compiler_params=pltpu.CompilerParams(
                dimension_semantics=("parallel",),
                vmem_limit_bytes=VMEM_LIMIT_BYTES,
            ),
        )(x2, t2)

        total = total + jnp.sum(partials)

    return total / jnp.float32(n_total)


def focal_loss_ref(inputs, targets, alpha=ALPHA, gamma=GAMMA):
    return jnp.mean(_focal_elementwise(inputs, targets, alpha, gamma))


if __name__ == "__main__":
    key = jax.random.PRNGKey(0)
    k1, k2, k3, k4 = jax.random.split(key, 4)

    # NCHW-shaped logits and binary targets (lane-aligned path, no mask emitted).
    x = jax.random.normal(k1, (2, 4, 16, 16), dtype=jnp.float32)
    t = (jax.random.uniform(k2, (2, 4, 16, 16)) > 0.5).astype(jnp.float32)

    out = jax.block_until_ready(focal_loss(x, t))
    ref = focal_loss_ref(x, t)
    assert jnp.allclose(out, ref, rtol=1e-5, atol=1e-6), (out, ref)

    # Ragged, non-128-divisible size in native bf16 (partial-block mask + jnp tail path).
    xr = jax.random.normal(k3, (3, 5, 7, 11), dtype=jnp.bfloat16)
    tr = (jax.random.uniform(k4, (3, 5, 7, 11)) > 0.5).astype(jnp.bfloat16)

    out_r = jax.block_until_ready(focal_loss(xr, tr))
    ref_r = focal_loss_ref(xr, tr)
    assert jnp.allclose(out_r, ref_r, rtol=1e-5, atol=1e-6), (out_r, ref_r)

    print("KERNEL_OK")
</pallas_src>

<mosaic_0001>
module attributes {stable_mosaic.version = 11 : i64} {
  func.func @_focal_loss_kernel(%arg0: i32, %arg1: memref<16x128xf32, #tpu.memory_space<vmem>>, %arg2: memref<16x128xf32, #tpu.memory_space<vmem>>, %arg3: memref<1x8x128xf32, #tpu.memory_space<vmem>>) attributes {dimension_semantics = [#tpu.dimension_semantics<parallel>], iteration_bounds = array<i64: 1>, scalar_prefetch = 0 : i64, scratch_operands = 0 : i64, tpu.core_type = #tpu.core_type<tc>, window_params = [{transform_indices = @transform_0, window_bounds = array<i64: 16, 128>}, {transform_indices = @transform_1, window_bounds = array<i64: 16, 128>}, {transform_indices = @transform_2, window_bounds = array<i64: 1, 8, 128>}]} {
    %c0 = arith.constant 0 : index
    %c0_0 = arith.constant 0 : index
    %0 = vector.load %arg1[%c0, %c0_0] : memref<16x128xf32, #tpu.memory_space<vmem>>, vector<16x128xf32>
    %c0_1 = arith.constant 0 : index
    %c0_2 = arith.constant 0 : index
    %1 = vector.load %arg2[%c0_1, %c0_2] : memref<16x128xf32, #tpu.memory_space<vmem>>, vector<16x128xf32>
    %cst = arith.constant 0.000000e+00 : f32
    %2 = vector.broadcast %cst : f32 to vector<16x128xf32>
    %3 = arith.maximumf %0, %2 : vector<16x128xf32>
    %4 = arith.mulf %0, %1 : vector<16x128xf32>
    %5 = arith.subf %3, %4 : vector<16x128xf32>
    %6 = math.absf %0 : vector<16x128xf32>
    %cst_3 = arith.constant 0.000000e+00 : f32
    %7 = vector.broadcast %cst_3 : f32 to vector<16x128xf32>
    %8 = arith.subf %7, %6 : vector<16x128xf32>
    %9 = math.exp %8 : vector<16x128xf32>
    %10 = math.log1p %9 : vector<16x128xf32>
    %11 = arith.addf %5, %10 : vector<16x128xf32>
    %cst_4 = arith.constant 0.000000e+00 : f32
    %12 = vector.broadcast %cst_4 : f32 to vector<16x128xf32>
    %13 = arith.subf %12, %11 : vector<16x128xf32>
    %14 = math.exp %13 : vector<16x128xf32>
    %cst_5 = arith.constant 1.000000e+00 : f32
    %15 = vector.broadcast %cst_5 : f32 to vector<16x128xf32>
    %16 = arith.subf %15, %14 : vector<16x128xf32>
    %17 = arith.mulf %16, %16 : vector<16x128xf32>
    %cst_6 = arith.constant 8.500000e-01 : f32
    %18 = vector.broadcast %cst_6 : f32 to vector<16x128xf32>
    %19 = arith.mulf %18, %17 : vector<16x128xf32>
    %20 = arith.mulf %19, %11 : vector<16x128xf32>
    %21 = vector.shape_cast %20 : vector<16x128xf32> to vector<2x8x128xf32>
    %cst_7 = arith.constant dense<0.000000e+00> : vector<8x128xf32>
    %22 = vector.multi_reduction <add>, %21, %cst_7 [0] : vector<2x8x128xf32> to vector<8x128xf32>
    %23 = vector.shape_cast %22 : vector<8x128xf32> to vector<1x8x128xf32>
    %c0_8 = arith.constant 0 : index
    %c0_9 = arith.constant 0 : index
    %c0_10 = arith.constant 0 : index
    %24 = vector.load %arg3[%c0_8, %c0_9, %c0_10] : memref<1x8x128xf32, #tpu.memory_space<vmem>>, vector<1x8x128xf32>
    tpu.vector_store %arg3[%c0_8, %c0_9, %c0_10], %23 {strides = array<i32>} : memref<1x8x128xf32, #tpu.memory_space<vmem>>, vector<1x8x128xf32>,
    return
  }
  func.func @transform_0(%arg0: i32) -> (i32, i32) {
    %c0_i32 = arith.constant 0 : i32
    %c0_i32_0 = arith.constant 0 : i32
    return %arg0, %c0_i32 : i32, i32
  }
  func.func @transform_1(%arg0: i32) -> (i32, i32) {
    %c0_i32 = arith.constant 0 : i32
    %c0_i32_0 = arith.constant 0 : i32
    return %arg0, %c0_i32 : i32, i32
  }
  func.func @transform_2(%arg0: i32) -> (i32, i32, i32) {
    %c0_i32 = arith.constant 0 : i32
    %c0_i32_0 = arith.constant 0 : i32
    %c0_i32_1 = arith.constant 0 : i32
    return %arg0, %c0_i32, %c0_i32_0 : i32, i32, i32
  }
}

</mosaic_0001>

<bundles_post_ra>
// kernel: tpu_custom_call.1
= control target key start
LH: loop header
LB: loop body
LE: loop exit
PB: predicated region body
PF: predicated region fallthrough
CT: control target
= control target key end

     0   :  { %7 = vsyncpa [#allocation3], 0  ;;  %s222_s0 = inlined_call_operand.hbm [shape: f32[16,128], index: 0, kind: input, shape index: {}]   ;;  %s223_s1 = inlined_call_operand.hbm [shape: f32[16,128], index: 1, kind: input, shape index: {}]   ;;  %s224_s2 = inlined_call_operand.hbm [shape: f32[1,8,128], index: 2, kind: output, shape index: {}]  }
   0x1   :  { %8 = vsyncpa [#allocation6], 0 }
   0x2   :  { %9 = vsyncpa [#allocation4], 0  ;;  %s193_s9 = smov [#allocation2]  }
   0x3   :  { %s15_s10 = sshll.u32 %s193_s9, 4  ;;  %s16_s10 = int_to_ptr.vmem [resolvable:$true] %s15_s10 }
   0x4   :  { %s135_s11 = scalar_lea.vmem %s16_s10, 256  ;;  %p140_p1 = scmp.lt.s32.totalorder %s16_s10, %s16_s10 }
   0x5   :  { %p136_p0 = scmp.ne.s32.totalorder %s16_s10, %s135_s11  ;;  %p141_p2 = scmp.lt.s32.totalorder %s135_s11, %s135_s11 }
   0x7   :  { %p142_p3 = por %p141_p2, %p140_p1 }
   0x9   :  { %p143_p4 = pnand %p142_p3, %p136_p0 }
   0xb   :  { %146 = shalt.err (!%p143_p4)
}
   0xc   :  { %s194_s12 = smov 128   ;;  %s195_s13 = smov 8  }
   0xd   :  { %21 = dma.hbm_to_vmem [thread:$0]  %s222_s0, 256, %s16_s10, [#allocation3], %s194_s12, %s194_s12, %s195_s13  }
   0xe   :  { %s196_s16 = smov [#allocation5]  }
   0xf   :  { %s27_s17 = sshll.u32 %s196_s16, 4  ;;  %s28_s17 = int_to_ptr.vmem [resolvable:$true] %s27_s17 }
  0x10   :  { %s155_s18 = scalar_lea.vmem %s28_s17, 256  ;;  %p160_p6 = scmp.lt.s32.totalorder %s28_s17, %s28_s17 }
  0x11   :  { %p156_p5 = scmp.ne.s32.totalorder %s28_s17, %s155_s18  ;;  %p161_p7 = scmp.lt.s32.totalorder %s155_s18, %s155_s18 }
  0x13   :  { %p162_p8 = por %p161_p7, %p160_p6 }
  0x15   :  { %p163_p9 = pnand %p162_p8, %p156_p5 }
  0x17   :  { %166 = shalt.err (!%p163_p9)
}
  0x18   :  { %33 = dma.hbm_to_vmem [thread:$0]  %s223_s1, 256, %s28_s17, [#allocation6], %s194_s12, %s194_s12, %s195_s13  }
  0x19   :  { %187 = dma.done.wait [#allocation3], 256  }
  0x1a   :  { %188 = vsyncadd [#allocation3], 4294967040 }
  0x1b   :  { %189 = dma.done.wait [#allocation6], 256  }
  0x1c   :  { %190 = vsyncadd [#allocation6], 4294967040  ;;  %v40_v0 = vld [vmem:[#allocation2] sm:$0xff]  ;;  %v41_v1 = vld [vmem:[#allocation2 + $0x8] sm:$0xff]  ;;  %s197_s0 = smov [#allocation7]  }
  0x1d   :  { %v50_v2 = vand.u32 2147483647, %v40_v0  ;;  %v51_v3 = vand.u32 2147483647, %v41_v1  ;;  %v42_v14 = vld [vmem:[#allocation5] sm:$0xff]  ;;  %v43_v15 = vld [vmem:[#allocation5 + $0x8] sm:$0xff] }
  0x1e   :  { %v44_v17 = vmax.f32 %v40_v0, 0.0  ;;  %v46_v18 = vmul.f32 %v42_v14, %v40_v0  ;;  %v45_v21 = vmax.f32 %v41_v1, 0.0  ;;  %v47_v22 = vmul.f32 %v43_v15, %v41_v1  ;;  %s100_s1 = sshll.u32 %s197_s0, 4  ;;  %s101_s1 = int_to_ptr.vmem [resolvable:$true] %s100_s1 }
  0x1f   :  { %v52_v4 = vsub.f32 0.0, %v50_v2  ;;  %v53_v5 = vsub.f32 0.0, %v51_v3  ;;  %s167_s21 = scalar_lea.vmem %s101_s1, 128  ;;  %p172_p11 = scmp.lt.s32.totalorder %s101_s1, %s101_s1 }
  0x20   :  { %v48_v26 = vsub.f32 %v44_v17, %v46_v18  ;;  %v49_v29 = vsub.f32 %v45_v21, %v47_v22  ;;  %p168_p10 = scmp.ne.s32.totalorder %s101_s1, %s167_s21  ;;  %p173_p12 = scmp.lt.s32.totalorder %s167_s21, %s167_s21 }
  0x21   :  { %v54_v6 = vmul.f32 1.442695, %v52_v4  ;;  %v56_v7 = vmul.f32 1.442695, %v53_v5 }
  0x22   :  { %p174_p13 = por %p173_p12, %p172_p11 }
  0x23   :  { %115 = vpow2.f32 %v54_v6 }
  0x24   :  { %117 = vpow2.f32 %v56_v7  ;;  %p175_p0 = pnand %p174_p13, %p168_p10 }
  0x30   :  { %v116_v8 = vpop.eup %115 }
  0x31   :  { %v118_v9 = vpop.eup %117  ;;  %v58_v10 = vadd.f32 1.0, %v116_v8  ;;  %v61_v12 = vmul.f32 -0.5, %v116_v8  ;;  %v64_v19 = vand.u32 2147483647, %v116_v8 }
  0x32   :  { %v67_v11 = vadd.f32 1.0, %v118_v9  ;;  %v70_v13 = vmul.f32 -0.5, %v118_v9  ;;  %v73_v23 = vand.u32 2147483647, %v118_v9 }
  0x33   :  { %119 = vlog2.f32 %v58_v10  ;;  %v62_v16 = vadd.f32 1.0, %v61_v12  ;;  %vm65_vm0 = vcmp.lt.f32.partialorder %v64_v19, 0.0004427343 }
  0x34   :  { %121 = vlog2.f32 %v67_v11  ;;  %v71_v20 = vadd.f32 1.0, %v70_v13  ;;  %vm74_vm1 = vcmp.lt.f32.partialorder %v73_v23, 0.0004427343 }
  0x35   :  { %v63_v24 = vmul.f32 %v116_v8, %v62_v16 }
  0x36   :  { %v72_v27 = vmul.f32 %v118_v9, %v71_v20 }
  0x40   :  { %v120_v25 = vpop.eup %119 }
  0x41   :  { %v122_v28 = vpop.eup %121  ;;  %v60_v30 = vmul.f32 0.6931472, %v120_v25 }
  0x42   :  { %v69_v31 = vmul.f32 0.6931472, %v122_v28 }
  0x43   :  { %v66_v32 = vsel %vm65_vm0, %v63_v24, %v60_v30 }
  0x44   :  { %v75_v33 = vsel %vm74_vm1, %v72_v27, %v69_v31  ;;  %v76_v34 = vadd.f32 %v66_v32, %v48_v26 }
  0x45   :  { %v77_v35 = vadd.f32 %v75_v33, %v49_v29 }
  0x46   :  { %v78_v36 = vsub.f32 0.0, %v76_v34 }
  0x47   :  { %v79_v37 = vsub.f32 0.0, %v77_v35 }
  0x48   :  { %v80_v38 = vmul.f32 1.442695, %v78_v36 }
  0x49   :  { %v82_v39 = vmul.f32 1.442695, %v79_v37 }
  0x4a   :  { %123 = vpow2.f32 %v80_v38 }
  0x4b   :  { %125 = vpow2.f32 %v82_v39 }
  0x57   :  { %v124_v40 = vpop.eup %123 }
  0x58   :  { %v126_v41 = vpop.eup %125  ;;  %v84_v42 = vsub.f32 1.0, %v124_v40 }
  0x59   :  { %v85_v43 = vsub.f32 1.0, %v126_v41 }
  0x5a   :  { %v86_v44 = vmul.f32 %v84_v42, %v84_v42 }
  0x5b   :  { %v87_v45 = vmul.f32 %v85_v43, %v85_v43 }
  0x5c   :  { %v88_v46 = vmul.f32 0.85, %v86_v44 }
  0x5d   :  { %v89_v47 = vmul.f32 0.85, %v87_v45 }
  0x5e   :  { %v90_v48 = vmul.f32 %v88_v46, %v76_v34 }
  0x5f   :  { %v91_v49 = vmul.f32 %v89_v47, %v77_v35 }
  0x61   :  { %v92_v50 = vadd.f32 %v91_v49, %v90_v48 }
  0x63   :  { %93 = vst [vmem:[#allocation7] sm:$0xff] %v92_v50 }
  0x64   :  { %178 = shalt.err (!%p175_p0)
}
  0x65   :  { %103 = dma.vmem_to_hbm [thread:$0]  %s101_s1, 128, %s224_s2, [#allocation4]  }
  0x66   :  { %191 = dma.done.wait [#allocation4], 128  }
  0x67   :  { %192 = vsyncadd [#allocation4], 4294967168 }
  0x68   :  { %107 = vsyncpa [#allocation3], 1 }
  0x69   :  { %108 = vsyncpa [#allocation6], 1 }
  0x6a   :  { %109 = vsyncpa [#allocation4], 1 }

</bundles_post_ra>
